<compile_context>
chip_gen: v7x
topology: tpu7x:2x2x1
jax: 0.10.0
libtpu: 0.0.40
codegen_flags: <defaults>
</compile_context>

<pallas_src>
import jax
import jax.numpy as jnp
from jax.experimental import pallas as pl
from jax.experimental.pallas import tpu as pltpu

DENSE1_SIZE = 128
DENSE2_SIZE = 64
LANE = 128


# --------------------------------------------------------------------------- #
# Kernel
# --------------------------------------------------------------------------- #
def mlp_kernel(x_ref, w1_ref, b1_ref, w2_ref, b2_ref, o_ref, acc_ref):
    k = pl.program_id(1)

    @pl.when(k == 0)
    def _():
        acc_ref[...] = jnp.zeros_like(acc_ref)

    # fc1 partial product: cast the f32 x tile to bf16 in-kernel (free VPU work
    # in a mem-bound kernel) -> bf16 MXU matmul with f32 accumulation.
    acc_ref[...] += jnp.dot(x_ref[...].astype(jnp.bfloat16), w1_ref[...],
                            preferred_element_type=jnp.float32)

    @pl.when(k == pl.num_programs(1) - 1)
    def _():
        # bias + ReLU in f32 (VPU)
        h = jnp.maximum(acc_ref[...] + b1_ref[...], 0.0)
        # fc2: bf16 MXU matmul, f32 accumulate, then bias + Sigmoid (EUP)
        o = jnp.dot(h.astype(jnp.bfloat16), w2_ref[...],
                    preferred_element_type=jnp.float32)
        o_ref[...] = jax.nn.sigmoid(o + b2_ref[...]).astype(o_ref.dtype)


# --------------------------------------------------------------------------- #
# Tiling / VMEM budgeting helpers
# --------------------------------------------------------------------------- #
def _cdiv(a, b):
    return -(-a // b)


def _round_up(a, b):
    return _cdiv(a, b) * b


def _vmem_limit_bytes():
    """Generation-aware scoped-VMEM limit with headroom."""
    cap = 64 << 20  # conservative fallback (v7x per-TC physical)
    try:
        cap = int(pltpu.get_tpu_info().vmem_capacity_bytes)
    except Exception:
        pass
    # leave ~24 MiB headroom for compiler internals; never exceed 96 MiB
    return int(max(32 << 20, min(cap - (24 << 20), 96 << 20)))


def _tile_costs(tk, n2_pad):
    """Approximate VMEM bytes: fixed (weights/biases) and per-batch-row."""
    fixed = (2 * tk * DENSE1_SIZE * 2            # W1 tile, bf16, double-buffered
             + 2 * DENSE1_SIZE * n2_pad * 2      # W2, bf16, double-buffered
             + 4 * (DENSE1_SIZE + n2_pad) * 4)   # biases (generous)
    per_row = (2 * tk * 4                        # x tile, f32, double-buffered
               + tk * 2                          # in-kernel bf16 copy of x tile
               + 2 * n2_pad * 4                  # output tile, f32, double-buffered
               + DENSE1_SIZE * 16)               # acc scratch + h/o temps
    return fixed, per_row


def _choose_tiles(batch, d_in, n2_pad, vmem_limit):
    budget = int(vmem_limit * 0.7)
    kp0 = _round_up(d_in, LANE)

    # K tile: keep the full (lane-padded) d_in when it fits; otherwise halve
    # until a 16-row batch tile fits the budget (guards v7x, 64 MiB VMEM).
    tk = kp0
    while True:
        fixed, per_row = _tile_costs(tk, n2_pad)
        if fixed + 16 * per_row <= budget or tk <= LANE:
            break
        tk = max(LANE, _round_up(tk // 2, LANE))
    fixed, per_row = _tile_costs(tk, n2_pad)

    # Batch tile: biggest multiple of 16 that fits the budget, capped at 1024
    # and at round_up(B, 16) so we never pad x by a whole extra tile.
    rows = max(16, (budget - fixed) // per_row)
    tb_budget = max(16, min(1024, (rows // 16) * 16))
    tb = min(tb_budget, _round_up(batch, 16))

    # v7x megacore only engages with >= 2 grid steps on the "parallel" axis.
    if batch > 16 and _cdiv(batch, tb) < 2:
        tb = _round_up(_cdiv(batch, 2), 16)

    kp = _round_up(kp0, tk)
    return tb, tk, kp


# --------------------------------------------------------------------------- #
# Forward wrapper
# --------------------------------------------------------------------------- #
def mlp_forward(x_nchw, w1, b1, w2, b2):
    """x_nchw: [B, C, H, W] float32. Returns [B, DENSE2_SIZE] float32."""
    B = x_nchw.shape[0]
    x_flat = x_nchw.reshape(B, -1)          # nn.Flatten (plain JAX glue)
    d_in = x_flat.shape[1]

    n2_pad = _round_up(DENSE2_SIZE, LANE)   # lane-dense fc2 output (128 cols)
    vmem_limit = _vmem_limit_bytes()
    TB, TK, KP = _choose_tiles(B, d_in, n2_pad, vmem_limit)
    B_pad = _cdiv(B, TB) * TB

    # One-time weight prep (small): pad K / N and cast to bf16. Biases stay f32.
    w1_bf = jnp.zeros((KP, DENSE1_SIZE), jnp.bfloat16)
    w1_bf = w1_bf.at[:d_in, :].set(w1.astype(jnp.bfloat16))
    w2_bf = jnp.zeros((DENSE1_SIZE, n2_pad), jnp.bfloat16)
    w2_bf = w2_bf.at[:, :DENSE2_SIZE].set(w2.astype(jnp.bfloat16))
    b1_r = b1.reshape(1, DENSE1_SIZE).astype(jnp.float32)
    b2_r = jnp.zeros((1, n2_pad), jnp.float32)
    b2_r = b2_r.at[0, :DENSE2_SIZE].set(b2.astype(jnp.float32))

    # x stays f32 (no wrapper-side bf16 materialization). Pad only if ragged.
    if B_pad != B or KP != d_in:
        x_in = jnp.zeros((B_pad, KP), jnp.float32).at[:B, :d_in].set(x_flat)
    else:
        x_in = x_flat

    grid = (B_pad // TB, KP // TK)          # reduction (K) axis last
    k_steps = grid[1]

    flops = 2 * B_pad * KP * DENSE1_SIZE + 2 * B_pad * DENSE1_SIZE * n2_pad
    bytes_accessed = (B_pad * KP * 4                                     # x (f32)
                      + w1_bf.size * 2 * (grid[0] if k_steps > 1 else 1)  # W1
                      + w2_bf.size * 2 + b1_r.size * 4 + b2_r.size * 4
                      + B_pad * n2_pad * 4)                              # output

    out = pl.pallas_call(
        mlp_kernel,
        out_shape=jax.ShapeDtypeStruct((B_pad, n2_pad), jnp.float32),
        grid=grid,
        in_specs=[
            pl.BlockSpec((TB, TK), lambda i, k: (i, k)),               # x (f32)
            pl.BlockSpec((TK, DENSE1_SIZE), lambda i, k: (k, 0)),      # W1 (bf16)
            pl.BlockSpec((1, DENSE1_SIZE), lambda i, k: (0, 0)),       # b1 (f32)
            pl.BlockSpec((DENSE1_SIZE, n2_pad), lambda i, k: (0, 0)),  # W2 (bf16)
            pl.BlockSpec((1, n2_pad), lambda i, k: (0, 0)),            # b2 (f32)
        ],
        out_specs=pl.BlockSpec((TB, n2_pad), lambda i, k: (i, 0)),
        scratch_shapes=[pltpu.VMEM((TB, DENSE1_SIZE), jnp.float32)],   # fc1 acc
        compiler_params=pltpu.CompilerParams(
            dimension_semantics=("parallel", "arbitrary"),
            vmem_limit_bytes=vmem_limit,
        ),
        cost_estimate=pl.CostEstimate(
            flops=flops,
            transcendentals=B_pad * n2_pad,      # sigmoid exp
            bytes_accessed=bytes_accessed,
        ),
    )(x_in, w1_bf, b1_r, w2_bf, b2_r)

    return out[:B, :DENSE2_SIZE]


# --------------------------------------------------------------------------- #
# Params + smoke test
# --------------------------------------------------------------------------- #
def init_params(key, d_in):
    """Deterministic PyTorch-style (Kaiming-uniform-ish) Linear init."""
    k1, k2, k3, k4 = jax.random.split(key, 4)
    bound1 = 1.0 / jnp.sqrt(d_in)
    bound2 = 1.0 / jnp.sqrt(DENSE1_SIZE)
    # stored as [in, out] (transpose of PyTorch's [out, in])
    w1 = jax.random.uniform(k1, (d_in, DENSE1_SIZE), jnp.float32, -bound1, bound1)
    b1 = jax.random.uniform(k2, (DENSE1_SIZE,), jnp.float32, -bound1, bound1)
    w2 = jax.random.uniform(k3, (DENSE1_SIZE, DENSE2_SIZE), jnp.float32, -bound2, bound2)
    b2 = jax.random.uniform(k4, (DENSE2_SIZE,), jnp.float32, -bound2, bound2)
    return w1, b1, w2, b2


if __name__ == "__main__":
    key = jax.random.PRNGKey(0)
    kx, kp = jax.random.split(key)

    # Small image-like module input: [B, C, H, W]  ->  input_shape = 1024
    B, C, H, W = 2, 4, 16, 16
    d_in = C * H * W
    x = jax.random.normal(kx, (B, C, H, W), jnp.float32)

    w1, b1, w2, b2 = init_params(kp, d_in)

    out = mlp_forward(x, w1, b1, w2, b2)
    out = jax.block_until_ready(out)
    assert out.shape == (B, DENSE2_SIZE)

    # Reference 1: same bf16-operand semantics as the kernel (tight check)
    x_flat = x.reshape(B, -1)
    xb = x_flat.astype(jnp.bfloat16).astype(jnp.float32)
    w1b = w1.astype(jnp.bfloat16).astype(jnp.float32)
    w2b = w2.astype(jnp.bfloat16).astype(jnp.float32)
    h = jnp.maximum(xb @ w1b + b1, 0.0)
    hb = h.astype(jnp.bfloat16).astype(jnp.float32)
    ref_bf = jax.nn.sigmoid(hb @ w2b + b2)
    assert jnp.allclose(out, ref_bf, atol=1e-4, rtol=1e-4)

    # Reference 2: pure f32 module semantics (loose check — bf16 MXU operands)
    ref_f32 = jax.nn.sigmoid(jnp.maximum(x_flat @ w1 + b1, 0.0) @ w2 + b2)
    assert jnp.allclose(out, ref_f32, atol=5e-2, rtol=5e-2)

    print("KERNEL_OK")
</pallas_src>

<mosaic_0001>
module attributes {stable_mosaic.version = 11 : i64} {
  func.func @mlp_kernel(%arg0: i32, %arg1: i32, %arg2: memref<16x1024xf32, #tpu.memory_space<vmem>>, %arg3: memref<1024x128xbf16, #tpu.memory_space<vmem>>, %arg4: memref<1x128xf32, #tpu.memory_space<vmem>>, %arg5: memref<128x128xbf16, #tpu.memory_space<vmem>>, %arg6: memref<1x128xf32, #tpu.memory_space<vmem>>, %arg7: memref<16x128xf32, #tpu.memory_space<vmem>>, %arg8: memref<16x128xf32, #tpu.memory_space<vmem>>) attributes {dimension_semantics = [#tpu.dimension_semantics<parallel>, #tpu.dimension_semantics<arbitrary>], iteration_bounds = array<i64: 1, 1>, scalar_prefetch = 0 : i64, scratch_operands = 1 : i64, tpu.core_type = #tpu.core_type<tc>, window_params = [{transform_indices = @transform_0, window_bounds = array<i64: 16, 1024>}, {transform_indices = @transform_1, window_bounds = array<i64: 1024, 128>}, {pipeline_mode = #tpu.pipeline_mode<synchronous>, transform_indices = @transform_2, window_bounds = array<i64: 1, 128>}, {pipeline_mode = #tpu.pipeline_mode<synchronous>, transform_indices = @transform_3, window_bounds = array<i64: 128, 128>}, {pipeline_mode = #tpu.pipeline_mode<synchronous>, transform_indices = @transform_4, window_bounds = array<i64: 1, 128>}, {transform_indices = @transform_5, window_bounds = array<i64: 16, 128>}]} {
    %c0_i32 = arith.constant 0 : i32
    %0 = arith.cmpi eq, %arg1, %c0_i32 : i32
    %1 = arith.extui %0 : i1 to i32
    %c0_i32_0 = arith.constant 0 : i32
    %2 = arith.cmpi ne, %1, %c0_i32_0 : i32
    scf.if %2 {
      %cst_10 = arith.constant 0.000000e+00 : f32
      %13 = vector.broadcast %cst_10 : f32 to vector<16x128xf32>
      %c0_11 = arith.constant 0 : index
      %c0_12 = arith.constant 0 : index
      %14 = vector.load %arg8[%c0_11, %c0_12] : memref<16x128xf32, #tpu.memory_space<vmem>>, vector<16x128xf32>
      tpu.vector_store %arg8[%c0_11, %c0_12], %13 {strides = array<i32>} : memref<16x128xf32, #tpu.memory_space<vmem>>, vector<16x128xf32>,
    } else {
    }
    %c0 = arith.constant 0 : index
    %c0_1 = arith.constant 0 : index
    %3 = vector.load %arg8[%c0, %c0_1] : memref<16x128xf32, #tpu.memory_space<vmem>>, vector<16x128xf32>
    %c0_2 = arith.constant 0 : index
    %c0_3 = arith.constant 0 : index
    %4 = vector.load %arg2[%c0_2, %c0_3] : memref<16x1024xf32, #tpu.memory_space<vmem>>, vector<16x1024xf32>
    %5 = arith.truncf %4 : vector<16x1024xf32> to vector<16x1024xbf16>
    %c0_4 = arith.constant 0 : index
    %c0_5 = arith.constant 0 : index
    %6 = vector.load %arg3[%c0_4, %c0_5] : memref<1024x128xbf16, #tpu.memory_space<vmem>>, vector<1024x128xbf16>
    %cst = arith.constant dense<0.000000e+00> : vector<16x128xf32>
    %7 = tpu.matmul %5, %6, %cst {dimension_numbers = #tpu.dot_dimension_numbers<[1], [0], [0], [1], [0, 0, 1, 1], [], []>} : vector<16x1024xbf16>, vector<1024x128xbf16>, vector<16x128xf32> -> vector<16x128xf32>
    %8 = arith.addf %3, %7 : vector<16x128xf32>
    %c0_6 = arith.constant 0 : index
    %c0_7 = arith.constant 0 : index
    %9 = vector.load %arg8[%c0_6, %c0_7] : memref<16x128xf32, #tpu.memory_space<vmem>>, vector<16x128xf32>
    tpu.vector_store %arg8[%c0_6, %c0_7], %8 {strides = array<i32>} : memref<16x128xf32, #tpu.memory_space<vmem>>, vector<16x128xf32>,
    %c0_i32_8 = arith.constant 0 : i32
    %10 = arith.cmpi eq, %arg1, %c0_i32_8 : i32
    %11 = arith.extui %10 : i1 to i32
    %c0_i32_9 = arith.constant 0 : i32
    %12 = arith.cmpi ne, %11, %c0_i32_9 : i32
    scf.if %12 {
      %c0_10 = arith.constant 0 : index
      %c0_11 = arith.constant 0 : index
      %13 = vector.load %arg8[%c0_10, %c0_11] : memref<16x128xf32, #tpu.memory_space<vmem>>, vector<16x128xf32>
      %c0_12 = arith.constant 0 : index
      %c0_13 = arith.constant 0 : index
      %14 = vector.load %arg4[%c0_12, %c0_13] : memref<1x128xf32, #tpu.memory_space<vmem>>, vector<1x128xf32>
      %15 = vector.broadcast %14 : vector<1x128xf32> to vector<16x128xf32>
      %16 = arith.addf %13, %15 : vector<16x128xf32>
      %cst_14 = arith.constant 0.000000e+00 : f32
      %17 = vector.broadcast %cst_14 : f32 to vector<16x128xf32>
      %18 = arith.maximumf %16, %17 : vector<16x128xf32>
      %19 = arith.truncf %18 : vector<16x128xf32> to vector<16x128xbf16>
      %c0_15 = arith.constant 0 : index
      %c0_16 = arith.constant 0 : index
      %20 = vector.load %arg5[%c0_15, %c0_16] : memref<128x128xbf16, #tpu.memory_space<vmem>>, vector<128x128xbf16>
      %cst_17 = arith.constant dense<0.000000e+00> : vector<16x128xf32>
      %21 = tpu.matmul %19, %20, %cst_17 {dimension_numbers = #tpu.dot_dimension_numbers<[1], [0], [0], [1], [0, 0, 1, 1], [], []>} : vector<16x128xbf16>, vector<128x128xbf16>, vector<16x128xf32> -> vector<16x128xf32>
      %c0_18 = arith.constant 0 : index
      %c0_19 = arith.constant 0 : index
      %22 = vector.load %arg6[%c0_18, %c0_19] : memref<1x128xf32, #tpu.memory_space<vmem>>, vector<1x128xf32>
      %23 = vector.broadcast %22 : vector<1x128xf32> to vector<16x128xf32>
      %24 = arith.addf %21, %23 : vector<16x128xf32>
      %25 = arith.negf %24 : vector<16x128xf32>
      %26 = math.exp %25 : vector<16x128xf32>
      %cst_20 = arith.constant 1.000000e+00 : f32
      %27 = vector.broadcast %cst_20 : f32 to vector<16x128xf32>
      %28 = arith.addf %27, %26 : vector<16x128xf32>
      %29 = arith.divf %27, %28 : vector<16x128xf32>
      %c0_21 = arith.constant 0 : index
      %c0_22 = arith.constant 0 : index
      %30 = vector.load %arg7[%c0_21, %c0_22] : memref<16x128xf32, #tpu.memory_space<vmem>>, vector<16x128xf32>
      tpu.vector_store %arg7[%c0_21, %c0_22], %29 {strides = array<i32>} : memref<16x128xf32, #tpu.memory_space<vmem>>, vector<16x128xf32>,
    } else {
    }
    return
  }
  func.func @transform_0(%arg0: i32, %arg1: i32) -> (i32, i32) {
    %c0_i32 = arith.constant 0 : i32
    return %arg0, %arg1 : i32, i32
  }
  func.func @transform_1(%arg0: i32, %arg1: i32) -> (i32, i32) {
    %c0_i32 = arith.constant 0 : i32
    %c0_i32_0 = arith.constant 0 : i32
    return %arg1, %c0_i32 : i32, i32
  }
  func.func @transform_2(%arg0: i32, %arg1: i32) -> (i32, i32) {
    %c0_i32 = arith.constant 0 : i32
    %c0_i32_0 = arith.constant 0 : i32
    %c0_i32_1 = arith.constant 0 : i32
    return %c0_i32, %c0_i32_0 : i32, i32
  }
  func.func @transform_3(%arg0: i32, %arg1: i32) -> (i32, i32) {
    %c0_i32 = arith.constant 0 : i32
    %c0_i32_0 = arith.constant 0 : i32
    %c0_i32_1 = arith.constant 0 : i32
    return %c0_i32, %c0_i32_0 : i32, i32
  }
  func.func @transform_4(%arg0: i32, %arg1: i32) -> (i32, i32) {
    %c0_i32 = arith.constant 0 : i32
    %c0_i32_0 = arith.constant 0 : i32
    %c0_i32_1 = arith.constant 0 : i32
    return %c0_i32, %c0_i32_0 : i32, i32
  }
  func.func @transform_5(%arg0: i32, %arg1: i32) -> (i32, i32) {
    %c0_i32 = arith.constant 0 : i32
    %c0_i32_0 = arith.constant 0 : i32
    return %arg0, %c0_i32 : i32, i32
  }
}

</mosaic_0001>

<bundles_post_ra>
// kernel: tpu_custom_call.1
= control target key start
LH: loop header
LB: loop body
LE: loop exit
PB: predicated region body
PF: predicated region fallthrough
CT: control target
= control target key end

     0   :  { %10 = vsyncpa [#allocation4], 0  ;;  %s1416_s0 = inlined_call_operand.hbm [shape: f32[16,1024], index: 0, kind: input, shape index: {}]   ;;  %s1417_s1 = inlined_call_operand.hbm [shape: bf16[1024,128], index: 1, kind: input, shape index: {}]   ;;  %s1418_s2 = inlined_call_operand.vmem [shape: f32[1,128], index: 2, kind: input, shape index: {}]   ;;  %s1419_s3 = inlined_call_operand.hbm [shape: bf16[128,128], index: 3, kind: input, shape index: {}]   ;;  %s1420_s4 = inlined_call_operand.vmem [shape: f32[1,128], index: 4, kind: input, shape index: {}]   ;;  %s1421_s5 = inlined_call_operand.hbm [shape: f32[16,128], index: 5, kind: output, shape index: {}]  }
   0x1   :  { %11 = vsyncpa [#allocation7], 0 }
   0x2   :  { %12 = vsyncpa [#allocation5], 0  ;;  %s1314_s18 = smov [#allocation6]   ;;  %s1220_s22 = scalar_lea.hbm %s1417_s1, 8192 }
   0x3   :  { %s30_s19 = sshll.u32 %s1314_s18, 4  ;;  %p1221_p0 = scmp.ne.s32.totalorder %s1417_s1, %s1220_s22  ;;  %s31_s19 = int_to_ptr.vmem [resolvable:$true] %s30_s19 }
   0x4   :  { %p1224_p1 = scmp.lt.u32.totalorder %s1220_s22, %s1417_s1 }
   0x6   :  { %p1226_p2 = pnand %p1224_p1, %p1221_p0 }
   0x8   :  { %1229 = shalt.err (!%p1226_p2)
}
   0x9   :  { %s1230_s27 = scalar_lea.vmem %s31_s19, 8192  ;;  %p1235_p4 = scmp.lt.s32.totalorder %s31_s19, %s31_s19 }
   0xa   :  { %p1231_p3 = scmp.ne.s32.totalorder %s31_s19, %s1230_s27  ;;  %p1236_p5 = scmp.lt.s32.totalorder %s1230_s27, %s1230_s27 }
   0xc   :  { %p1237_p6 = por %p1236_p5, %p1235_p4 }
   0xe   :  { %p1238_p7 = pnand %p1237_p6, %p1231_p3 }
  0x10   :  { %1241 = shalt.err (!%p1238_p7)
}
  0x11   :  { %s1315_s28 = smov 64   ;;  %s1316_s29 = smov 4  }
  0x12   :  { %36 = dma.hbm_to_vmem [thread:$0]  %s1417_s1, 8192, %s31_s19, [#allocation7], %s1315_s28, %s1315_s28, %s1316_s29  }
  0x13   :  { %s1317_s7 = smov [#allocation3]   ;;  %s1242_s11 = scalar_lea.hbm %s1416_s0, 2048 }
  0x14   :  { %s18_s8 = sshll.u32 %s1317_s7, 4  ;;  %p1243_p8 = scmp.ne.s32.totalorder %s1416_s0, %s1242_s11  ;;  %s19_s8 = int_to_ptr.vmem [resolvable:$true] %s18_s8 }
  0x15   :  { %p1246_p9 = scmp.lt.u32.totalorder %s1242_s11, %s1416_s0 }
  0x17   :  { %p1248_p10 = pnand %p1246_p9, %p1243_p8 }
  0x19   :  { %1251 = shalt.err (!%p1248_p10)
}
  0x1a   :  { %s1252_s16 = scalar_lea.vmem %s19_s8, 2048  ;;  %p1257_p12 = scmp.lt.s32.totalorder %s19_s8, %s19_s8 }
  0x1b   :  { %p1253_p11 = scmp.ne.s32.totalorder %s19_s8, %s1252_s16  ;;  %p1258_p13 = scmp.lt.s32.totalorder %s1252_s16, %s1252_s16 }
  0x1d   :  { %p1259_p0 = por %p1258_p13, %p1257_p12 }
  0x1f   :  { %p1260_p1 = pnand %p1259_p0, %p1253_p11 }
  0x21   :  { %1263 = shalt.err (!%p1260_p1)
}
  0x22   :  { %s1318_s1 = smov 1024   ;;  %s1319_s19 = smov [#allocation8]  }
  0x23   :  { %24 = dma.hbm_to_vmem [thread:$0]  %s1416_s0, 2048, %s19_s8, [#allocation4], %s1318_s1, %s1318_s1, %s1315_s28  }
  0x24   :  { %s44_s20 = sshll.u32 %s1319_s19, 4  ;;  %s1264_s23 = scalar_lea.hbm %s1419_s3, 1024  ;;  %s45_s20 = int_to_ptr.vmem [resolvable:$true] %s44_s20 }
  0x25   :  { %p1265_p2 = scmp.ne.s32.totalorder %s1419_s3, %s1264_s23  ;;  %p1268_p3 = scmp.lt.u32.totalorder %s1264_s23, %s1419_s3 }
  0x27   :  { %p1270_p4 = pnand %p1268_p3, %p1265_p2 }
  0x29   :  { %1273 = shalt.err (!%p1270_p4)
}
  0x2a   :  { %s1274_s30 = scalar_lea.vmem %s45_s20, 1024  ;;  %p1279_p6 = scmp.lt.s32.totalorder %s45_s20, %s45_s20 }
  0x2b   :  { %p1275_p5 = scmp.ne.s32.totalorder %s45_s20, %s1274_s30  ;;  %p1280_p7 = scmp.lt.s32.totalorder %s1274_s30, %s1274_s30 }
  0x2d   :  { %p1281_p8 = por %p1280_p7, %p1279_p6 }
  0x2f   :  { %p1282_p9 = pnand %p1281_p8, %p1275_p5 }
  0x31   :  { %1285 = shalt.err (!%p1282_p9)
}
  0x32   :  { %50 = dma.hbm_to_vmem [thread:$0]  %s1419_s3, 1024, %s45_s20, [#allocation7], %s1315_s28, %s1315_s28, %s1316_s29  }
  0x33   :  { %1308 = dma.done.wait [#allocation4], 2048  }
  0x34   :  { %1309 = vsyncadd [#allocation4], 4294965248 }
  0x35   :  { %1310 = dma.done.wait [#allocation7], 9216  }
  0x36   :  { %1311 = vsyncadd [#allocation7], 4294958080  ;;  %v1140_v0 = vld [vmem:[#allocation6 + $0x40] sm:$0xff]   ;;  %v1144_v4 = vld [vmem:[#allocation6 + $0x48] sm:$0xff]   ;;  %vm1321_vm0 = vmmov 0  }
  0x37   :  { %v1141_v1 = vld [vmem:[#allocation6 + $0xc0] sm:$0xff]   ;;  %1012 = vmatprep.subr.bf16.mxu0 %v1140_v0  ;;  %v1145_v5 = vld [vmem:[#allocation6 + $0xc8] sm:$0xff]   ;;  %v1148_v8 = vld [vmem:[#allocation6 + $0x50] sm:$0xff]  }
  0x38   :  { %v1142_v2 = vld [vmem:[#allocation6] sm:$0xff]   ;;  %1034 = vmatprep.subr.bf16.mxu1 %v1141_v1  ;;  %v1146_v6 = vld [vmem:[#allocation6 + $0x8] sm:$0xff]   ;;  %v1149_v9 = vld [vmem:[#allocation6 + $0xd0] sm:$0xff]  }
  0x39   :  { %v1143_v3 = vld [vmem:[#allocation6 + $0x80] sm:$0xff]   ;;  %1013 = vmatpush3.bf16.msra.mxu0 %v1142_v2  ;;  %v1147_v7 = vld [vmem:[#allocation6 + $0x88] sm:$0xff]   ;;  %v1150_v10 = vld [vmem:[#allocation6 + $0x10] sm:$0xff]  }
  0x3a   :  { %1035 = vmatpush3.bf16.msra.mxu1 %v1143_v3  ;;  %1014 = vmatprep.subr.bf16.mxu0 %v1144_v4  ;;  %v1151_v11 = vld [vmem:[#allocation6 + $0x90] sm:$0xff]   ;;  %v1152_v12 = vld [vmem:[#allocation6 + $0x58] sm:$0xff]   ;;  %v1156_v16 = vld [vmem:[#allocation6 + $0x60] sm:$0xff]  }
  0x3b   :  { %1036 = vmatprep.subr.bf16.mxu1 %v1145_v5  ;;  %v1153_v13 = vld [vmem:[#allocation6 + $0xd8] sm:$0xff]   ;;  %v1157_v17 = vld [vmem:[#allocation6 + $0xe0] sm:$0xff]   ;;  %v1160_v20 = vld [vmem:[#allocation6 + $0x68] sm:$0xff]  }
  0x3c   :  { %v1154_v14 = vld [vmem:[#allocation6 + $0x18] sm:$0xff]   ;;  %v1158_v18 = vld [vmem:[#allocation6 + $0x20] sm:$0xff]   ;;  %v1161_v21 = vld [vmem:[#allocation6 + $0xe8] sm:$0xff]  }
  0x3d   :  { %1015 = vmatpush3.bf16.msra.mxu0 %v1146_v6  ;;  %v1155_v15 = vld [vmem:[#allocation6 + $0x98] sm:$0xff]   ;;  %v1159_v19 = vld [vmem:[#allocation6 + $0xa0] sm:$0xff]   ;;  %v1162_v22 = vld [vmem:[#allocation6 + $0x28] sm:$0xff]  }
  0x3e   :  { %1037 = vmatpush3.bf16.msra.mxu1 %v1147_v7  ;;  %1016 = vmatprep.subr.bf16.mxu0 %v1148_v8  ;;  %v1163_v23 = vld [vmem:[#allocation6 + $0xa8] sm:$0xff]   ;;  %v1164_v24 = vld [vmem:[#allocation6 + $0x70] sm:$0xff]   ;;  %v1168_v28 = vld [vmem:[#allocation6 + $0x78] sm:$0xff]  }
  0x3f   :  { %1038 = vmatprep.subr.bf16.mxu1 %v1149_v9  ;;  %v1165_v25 = vld [vmem:[#allocation6 + $0xf0] sm:$0xff]   ;;  %v1169_v29 = vld [vmem:[#allocation6 + $0xf8] sm:$0xff]   ;;  %v72_v32 = vld [vmem:[#allocation3 + $0x8] sm:$0xff] }
  0x40   :  { %v1166_v26 = vld [vmem:[#allocation6 + $0x30] sm:$0xff]   ;;  %v1170_v30 = vld [vmem:[#allocation6 + $0x38] sm:$0xff]   ;;  %v80_v33 = vld [vmem:[#allocation3 + $0x48] sm:$0xff] }
  0x41   :  { %1017 = vmatpush3.bf16.msra.mxu0 %v1150_v10  ;;  %v1167_v27 = vld [vmem:[#allocation6 + $0xb0] sm:$0xff]   ;;  %v1171_v31 = vld [vmem:[#allocation6 + $0xb8] sm:$0xff]   ;;  %v88_v35 = vpack.c.bf16 %v80_v33, %v72_v32  ;;  %v71_v37 = vld [vmem:[#allocation3] sm:$0xff] }
  0x42   :  { %1039 = vmatpush3.bf16.msra.mxu1 %v1151_v11  ;;  %1018 = vmatprep.subr.bf16.mxu0 %v1152_v12  ;;  %v74_v34 = vld [vmem:[#allocation3 + $0x18] sm:$0xff]  ;;  %v79_v38 = vld [vmem:[#allocation3 + $0x40] sm:$0xff]  ;;  %v73_v41 = vld [vmem:[#allocation3 + $0x10] sm:$0xff] }
  0x43   :  { %1040 = vmatprep.subr.bf16.mxu1 %v1153_v13  ;;  %v82_v36 = vld [vmem:[#allocation3 + $0x58] sm:$0xff]  ;;  %v87_v40 = vpack.c.bf16 %v79_v38, %v71_v37  ;;  %v81_v42 = vld [vmem:[#allocation3 + $0x50] sm:$0xff]  ;;  %639 = vmatprep.mubr.bf16.mxu0 %v88_v35  ;;  %v1172_v44 = vld [vmem:[#allocation6 + $0x140] sm:$0xff]  }
  0x44   :  { %v90_v39 = vpack.c.bf16 %v82_v36, %v74_v34  ;;  %v89_v43 = vpack.c.bf16 %v81_v42, %v73_v41  ;;  %v1173_v45 = vld [vmem:[#allocation6 + $0x1c0] sm:$0xff]   ;;  %v1176_v48 = vld [vmem:[#allocation6 + $0x148] sm:$0xff]   ;;  %v1180_v52 = vld [vmem:[#allocation6 + $0x150] sm:$0xff]  }
  0x45   :  { %1019 = vmatpush3.bf16.msra.mxu0 %v1154_v14  ;;  %v1174_v46 = vld [vmem:[#allocation6 + $0x100] sm:$0xff]   ;;  %v1177_v49 = vld [vmem:[#allocation6 + $0x1c8] sm:$0xff]   ;;  %v1181_v53 = vld [vmem:[#allocation6 + $0x1d0] sm:$0xff]  }
  0x46   :  { %1041 = vmatpush3.bf16.msra.mxu1 %v1155_v15  ;;  %1020 = vmatprep.subr.bf16.mxu0 %v1156_v16  ;;  %v1175_v47 = vld [vmem:[#allocation6 + $0x180] sm:$0xff]   ;;  %v1178_v50 = vld [vmem:[#allocation6 + $0x108] sm:$0xff]   ;;  %v1182_v54 = vld [vmem:[#allocation6 + $0x110] sm:$0xff]  }
  0x47   :  { %1042 = vmatprep.subr.bf16.mxu1 %v1157_v17  ;;  %680 = vmatprep.mubr.bf16.mxu1 %v90_v39  ;;  %v1179_v51 = vld [vmem:[#allocation6 + $0x188] sm:$0xff]   ;;  %v1183_v55 = vld [vmem:[#allocation6 + $0x190] sm:$0xff]   ;;  %v1184_v56 = vld [vmem:[#allocation6 + $0x158] sm:$0xff]  }
  0x48   :  { %v1185_v57 = vld [vmem:[#allocation6 + $0x1d8] sm:$0xff]   ;;  %v1188_v60 = vld [vmem:[#allocation6 + $0x160] sm:$0xff]   ;;  %v1192_v0 = vld [vmem:[#allocation6 + $0x168] sm:$0xff]  }
  0x49   :  { %1021 = vmatpush3.bf16.msra.mxu0 %v1158_v18  ;;  %v1186_v58 = vld [vmem:[#allocation6 + $0x118] sm:$0xff]   ;;  %v1189_v61 = vld [vmem:[#allocation6 + $0x1e0] sm:$0xff]   ;;  %v1193_v1 = vld [vmem:[#allocation6 + $0x1e8] sm:$0xff]  }
  0x4a   :  { %1043 = vmatpush3.bf16.msra.mxu1 %v1159_v19  ;;  %1022 = vmatprep.subr.bf16.mxu0 %v1160_v20  ;;  %v1187_v59 = vld [vmem:[#allocation6 + $0x198] sm:$0xff]   ;;  %v1190_v62 = vld [vmem:[#allocation6 + $0x120] sm:$0xff]   ;;  %v1194_v2 = vld [vmem:[#allocation6 + $0x128] sm:$0xff]  }
  0x4b   :  { %1044 = vmatprep.subr.bf16.mxu1 %v1161_v21  ;;  %v1191_v63 = vld [vmem:[#allocation6 + $0x1a0] sm:$0xff]   ;;  %v1195_v3 = vld [vmem:[#allocation6 + $0x1a8] sm:$0xff]   ;;  %v1196_v4 = vld [vmem:[#allocation6 + $0x170] sm:$0xff]  }
  0x4c   :  { %v1197_v5 = vld [vmem:[#allocation6 + $0x1f0] sm:$0xff]   ;;  %v1200_v8 = vld [vmem:[#allocation6 + $0x178] sm:$0xff]   ;;  %v76_v12 = vld [vmem:[#allocation3 + $0x28] sm:$0xff] }
  0x4d   :  { %1023 = vmatpush3.bf16.msra.mxu0 %v1162_v22  ;;  %v1198_v6 = vld [vmem:[#allocation6 + $0x130] sm:$0xff]   ;;  %v1201_v9 = vld [vmem:[#allocation6 + $0x1f8] sm:$0xff]   ;;  %v84_v13 = vld [vmem:[#allocation3 + $0x68] sm:$0xff] }
  0x4e   :  { %1045 = vmatpush3.bf16.msra.mxu1 %v1163_v23  ;;  %1024 = vmatprep.subr.bf16.mxu0 %v1164_v24  ;;  %v1199_v7 = vld [vmem:[#allocation6 + $0x1b0] sm:$0xff]   ;;  %v1202_v10 = vld [vmem:[#allocation6 + $0x138] sm:$0xff]   ;;  %v92_v16 = vpack.c.bf16 %v84_v13, %v76_v12  ;;  %v75_v18 = vld [vmem:[#allocation3 + $0x20] sm:$0xff] }
  0x4f   :  { %1046 = vmatprep.subr.bf16.mxu1 %v1165_v25  ;;  %v1203_v11 = vld [vmem:[#allocation6 + $0x1b8] sm:$0xff]   ;;  %v83_v19 = vld [vmem:[#allocation3 + $0x60] sm:$0xff]  ;;  %v77_v20 = vld [vmem:[#allocation3 + $0x30] sm:$0xff]  ;;  %v1320_v25 = vmov 0.0  }
  0x50   :  { %v78_v14 = vld [vmem:[#allocation3 + $0x38] sm:$0xff]  ;;  %v91_v21 = vpack.c.bf16 %v83_v19, %v75_v18  ;;  %v85_v22 = vld [vmem:[#allocation3 + $0x70] sm:$0xff]  ;;  %v1204_v24 = vld [vmem:[#allocation8] sm:$0xff]  }
  0x51   :  { %1025 = vmatpush3.bf16.msra.mxu0 %v1166_v26  ;;  %v86_v15 = vld [vmem:[#allocation3 + $0x78] sm:$0xff]  ;;  %v93_v23 = vpack.c.bf16 %v85_v22, %v77_v20  ;;  %v1205_v26 = vld [vmem:[#allocation8 + $0x8] sm:$0xff]  }
  0x52   :  { %1047 = vmatpush3.bf16.msra.mxu1 %v1167_v27  ;;  %1026 = vmatprep.subr.bf16.mxu0 %v1168_v28  ;;  %v94_v17 = vpack.c.bf16 %v86_v15, %v78_v14  ;;  %v1206_v27 = vld [vmem:[#allocation8 + $0x10] sm:$0xff]   ;;  %v1207_v28 = vld [vmem:[#allocation8 + $0x18] sm:$0xff]  }
  0x53   :  { %1048 = vmatprep.subr.bf16.mxu1 %v1169_v29  ;;  %v1208_v29 = vld [vmem:[#allocation8 + $0x20] sm:$0xff]   ;;  %v1211_v32 = vld [vmem:[#allocation8 + $0x38] sm:$0xff]  }
  0x55   :  { %1027 = vmatpush3.bf16.msra.mxu0 %v1170_v30  ;;  %v1209_v30 = vld [vmem:[#allocation8 + $0x28] sm:$0xff]  }
  0x56   :  { %1049 = vmatpush3.bf16.msra.mxu1 %v1171_v31  ;;  %1056 = vmatprep.subr.bf16.mxu0 %v1172_v44  ;;  %v1210_v31 = vld [vmem:[#allocation8 + $0x30] sm:$0xff]  }
  0x57   :  { %1078 = vmatprep.subr.bf16.mxu1 %v1173_v45 }
  0x58   :  { %640 = vmatmul.mubr.bf16.vlgmr.msra.gmra.mrb[0].mxu0 %v87_v40 }
  0x59   :  { %681 = vmatmul.mubr.bf16.vlgmr.msra.gmra.mrb[0].mxu1 %v89_v43  ;;  %1057 = vmatpush3.bf16.msra.mxu0 %v1174_v46 }
  0x5a   :  { %1079 = vmatpush3.bf16.msra.mxu1 %v1175_v47  ;;  %1058 = vmatprep.subr.bf16.mxu0 %v1176_v48 }
  0x5b   :  { %1080 = vmatprep.subr.bf16.mxu1 %v1177_v49  ;;  %721 = vmatprep.mubr.bf16.mxu0 %v92_v16 }
  0x5c   :  { %762 = vmatprep.mubr.bf16.mxu1 %v94_v17 }
  0x5d   :  { %1059 = vmatpush3.bf16.msra.mxu0 %v1178_v50 }
  0x5e   :  { %1081 = vmatpush3.bf16.msra.mxu1 %v1179_v51  ;;  %1060 = vmatprep.subr.bf16.mxu0 %v1180_v52 }
  0x5f   :  { %1082 = vmatprep.subr.bf16.mxu1 %v1181_v53 }
  0x61   :  { %1061 = vmatpush3.bf16.msra.mxu0 %v1182_v54 }
  0x62   :  { %1083 = vmatpush3.bf16.msra.mxu1 %v1183_v55  ;;  %1062 = vmatprep.subr.bf16.mxu0 %v1184_v56 }
  0x63   :  { %1084 = vmatprep.subr.bf16.mxu1 %v1185_v57 }
  0x65   :  { %1063 = vmatpush3.bf16.msra.mxu0 %v1186_v58 }
  0x66   :  { %1085 = vmatpush3.bf16.msra.mxu1 %v1187_v59  ;;  %1064 = vmatprep.subr.bf16.mxu0 %v1188_v60  ;;  %v1000_v59 = vld [vmem:[%s1418_s2] ss:$0 sm:$0xff]  ;;  %s1322_s2 = smov [#allocation9]  }
  0x67   :  { %1086 = vmatprep.subr.bf16.mxu1 %v1189_v61  ;;  %s923_s8 = sshll.u32 %s1322_s2, 4  ;;  %s924_s8 = int_to_ptr.vmem [resolvable:$true] %s923_s8 }
  0x68   :  { %p1291_p11 = scmp.lt.s32.totalorder %s924_s8, %s924_s8 }
  0x69   :  { %1065 = vmatpush3.bf16.msra.mxu0 %v1190_v62 }
  0x6a   :  { %1087 = vmatpush3.bf16.msra.mxu1 %v1191_v63  ;;  %1066 = vmatprep.subr.bf16.mxu0 %v1192_v0 }
  0x6b   :  { %1088 = vmatprep.subr.bf16.mxu1 %v1193_v1 }
  0x6d   :  { %1067 = vmatpush3.bf16.msra.mxu0 %v1194_v2 }
  0x6e   :  { %1089 = vmatpush3.bf16.msra.mxu1 %v1195_v3  ;;  %1068 = vmatprep.subr.bf16.mxu0 %v1196_v4 }
  0x6f   :  { %1090 = vmatprep.subr.bf16.mxu1 %v1197_v5  ;;  %v1001_v5 = vld [vmem:[%s1420_s4] ss:$0 sm:$0xff]  ;;  %s1286_s4 = scalar_lea.vmem %s924_s8, 256 }
  0x70   :  { %p1287_p10 = scmp.ne.s32.totalorder %s924_s8, %s1286_s4  ;;  %p1292_p12 = scmp.lt.s32.totalorder %s1286_s4, %s1286_s4 }
  0x71   :  { %1069 = vmatpush3.bf16.msra.mxu0 %v1198_v6 }
  0x72   :  { %1091 = vmatpush3.bf16.msra.mxu1 %v1199_v7  ;;  %1070 = vmatprep.subr.bf16.mxu0 %v1200_v8  ;;  %p1293_p13 = por %p1292_p12, %p1291_p11 }
  0x73   :  { %1092 = vmatprep.subr.bf16.mxu1 %v1201_v9 }
  0x74   :  { %p1294_p0 = pnand %p1293_p13, %p1287_p10 }
  0x75   :  { %1071 = vmatpush3.bf16.msra.mxu0 %v1202_v10 }
  0x76   :  { %1093 = vmatpush3.bf16.msra.mxu1 %v1203_v11  ;;  %1109 = vmatprep.subr.bf16.mxu0 %v1320_v25 }
  0x78   :  { %722 = vmatmul.mubr.bf16.vlgmr.msra.gmra.mrb[4].mxu0 %v91_v21 }
  0x79   :  { %763 = vmatmul.mubr.bf16.vlgmr.msra.gmra.mrb[4].mxu1 %v93_v23  ;;  %1110 = vmatpush3.bf16.msra.mxu0 %v1204_v24 }
  0x7a   :  { %1111 = vmatprep.subr.bf16.mxu0 %v1320_v25  ;;  %1125 = vmatprep.mubr.msk.bf16.mxu0 %vm1321_vm0, %v1320_v25 }
  0x7d   :  { %1112 = vmatpush3.bf16.msra.mxu0 %v1205_v26 }
  0x7e   :  { %1113 = vmatprep.subr.bf16.mxu0 %v1320_v25 }
  0x81   :  { %1114 = vmatpush3.bf16.msra.mxu0 %v1206_v27 }
  0x82   :  { %1115 = vmatprep.subr.bf16.mxu0 %v1320_v25 }
  0x85   :  { %1116 = vmatpush3.bf16.msra.mxu0 %v1207_v28 }
  0x86   :  { %1117 = vmatprep.subr.bf16.mxu0 %v1320_v25 }
  0x89   :  { %1118 = vmatpush3.bf16.msra.mxu0 %v1208_v29 }
  0x8a   :  { %1119 = vmatprep.subr.bf16.mxu0 %v1320_v25 }
  0x8d   :  { %1120 = vmatpush3.bf16.msra.mxu0 %v1209_v30 }
  0x8e   :  { %1121 = vmatprep.subr.bf16.mxu0 %v1320_v25 }
  0x91   :  { %1122 = vmatpush3.bf16.msra.mxu0 %v1210_v31 }
  0x92   :  { %1123 = vmatprep.subr.bf16.mxu0 %v1320_v25 }
  0x95   :  { %1124 = vmatpush3.bf16.msra.mxu0 %v1211_v32 }
 0x12b   :  { %v1028_v33 = vpop.f32.mrb[0].mxu0 }
 0x12c   :  { %v1050_v34 = vpop.f32.mrb[0].mxu1  ;;  %v1029_v35 = vpop.f32.mrb[1].mxu0 }
 0x12d   :  { %v1030_v36 = vadd.f32 %v1029_v35, %v1028_v33  ;;  %v1051_v37 = vpop.f32.mrb[1].mxu1  ;;  %v1031_v38 = vpop.f32.mrb[2].mxu0 }
 0x12e   :  { %v1052_v39 = vadd.f32 %v1051_v37, %v1050_v34  ;;  %v1053_v40 = vpop.f32.mrb[2].mxu1  ;;  %v1032_v41 = vpop.f32.mrb[3].mxu0 }
 0x12f   :  { %v1033_v42 = vadd.f32 %v1032_v41, %v1031_v38  ;;  %v1054_v43 = vpop.f32.mrb[3].mxu1 }
 0x130   :  { %v683_v44 = vadd.f32 %v1052_v39, %v1030_v36  ;;  %v1055_v45 = vadd.f32 %v1054_v43, %v1053_v40 }
 0x132   :  { %v686_v46 = vadd.f32 %v1055_v45, %v1033_v42 }
 0x14b   :  { %v1072_v47 = vpop.f32.mrb[4].mxu0 }
 0x14c   :  { %v1094_v48 = vpop.f32.mrb[4].mxu1  ;;  %v1073_v49 = vpop.f32.mrb[5].mxu0 }
 0x14d   :  { %v1074_v50 = vadd.f32 %v1073_v49, %v1072_v47  ;;  %v1095_v51 = vpop.f32.mrb[5].mxu1  ;;  %v1075_v52 = vpop.f32.mrb[6].mxu0 }
 0x14e   :  { %v1096_v53 = vadd.f32 %v1095_v51, %v1094_v48  ;;  %v1097_v54 = vpop.f32.mrb[6].mxu1  ;;  %v1076_v55 = vpop.f32.mrb[7].mxu0 }
 0x14f   :  { %v724_v56 = vadd.f32 %v1074_v50, %v683_v44  ;;  %v1077_v57 = vadd.f32 %v1076_v55, %v1075_v52  ;;  %v1098_v58 = vpop.f32.mrb[7].mxu1 }
 0x150   :  { %v1099_v60 = vadd.f32 %v1098_v58, %v1097_v54 }
 0x151   :  { %v765_v61 = vadd.f32 %v1096_v53, %v724_v56  ;;  %v727_v62 = vadd.f32 %v1077_v57, %v686_v46 }
 0x153   :  { %v787_v63 = vadd.f32 %v1000_v59, %v765_v61  ;;  %v768_v0 = vadd.f32 %v1099_v60, %v727_v62 }
 0x155   :  { %v788_v1 = vadd.f32 %v1000_v59, %v768_v0  ;;  %v789_v2 = vmax.f32 %v787_v63, 0.0 }
 0x157   :  { %v790_v3 = vmax.f32 %v788_v1, 0.0 }
 0x159   :  { %v791_v4 = vpack.c.bf16 %v790_v3, %v789_v2 }
 0x15b   :  { %1126 = vmatmul.mubr.bf16.vlgmr.msra.gmra.mrb[8].mxu0 %v791_v4 }
 0x22e   :  { %v897_v6 = vpop.f32.mrb[8].mxu0 }
 0x22f   :  { %v898_v7 = vadd.f32 %v1001_v5, %v897_v6  ;;  %v1127_v8 = vpop.f32.mrb[9].mxu0 }
 0x230   :  { %v900_v9 = vpop.f32.mrb[10].mxu0 }
 0x231   :  { %v1010_v10 = vmul.f32 -1.442695, %v898_v7  ;;  %v901_v11 = vadd.f32 %v1001_v5, %v900_v9  ;;  %v1128_v12 = vpop.f32.mrb[11].mxu0 }
 0x233   :  { %1212 = vpow2.f32 %v1010_v10  ;;  %v1011_v13 = vmul.f32 -1.442695, %v901_v11 }
 0x235   :  { %1214 = vpow2.f32 %v1011_v13 }
 0x23d   :  { %v1213_v14 = vpop.eup %1212 }
 0x23e   :  { %v910_v15 = vadd.f32 1.0, %v1213_v14 }
 0x23f   :  { %v1215_v16 = vpop.eup %1214 }
 0x240   :  { %1216 = vrcp.f32 %v910_v15  ;;  %v911_v17 = vadd.f32 1.0, %v1215_v16 }
 0x242   :  { %1218 = vrcp.f32 %v911_v17 }
 0x24a   :  { %v1217_v18 = vpop.eup %1216 }
 0x24b   :  { %916 = vst [vmem:[#allocation9] sm:$0xff] %v1217_v18 }
 0x24c   :  { %v1219_v19 = vpop.eup %1218 }
 0x24d   :  { %917 = vst [vmem:[#allocation9 + $0x8] sm:$0xff] %v1219_v19 }
 0x24e   :  { %1297 = shalt.err (!%p1294_p0)
}
 0x24f   :  { %s1298_s11 = scalar_lea.hbm %s1421_s5, 256 }
 0x250   :  { %p1299_p1 = scmp.ne.s32.totalorder %s1421_s5, %s1298_s11  ;;  %p1302_p2 = scmp.lt.u32.totalorder %s1298_s11, %s1421_s5 }
 0x252   :  { %p1304_p3 = pnand %p1302_p2, %p1299_p1 }
 0x254   :  { %1307 = shalt.err (!%p1304_p3)
}
 0x255   :  { %s1323_s16 = smov 128   ;;  %s1324_s1 = smov 8  }
 0x256   :  { %929 = dma.vmem_to_hbm [thread:$0]  %s924_s8, 256, %s1421_s5, [#allocation5], %s1323_s16, %s1323_s16, %s1324_s1  }
 0x257   :  { %1312 = dma.done.wait [#allocation5], 256  }
 0x258   :  { %1313 = vsyncadd [#allocation5], 4294967040 }
 0x259   :  { %933 = vsyncpa [#allocation4], 1 }
 0x25a   :  { %934 = vsyncpa [#allocation7], 1 }
 0x25b   :  { %935 = vsyncpa [#allocation5], 1 }

</bundles_post_ra>
